<compile_context>
chip_gen: v7x
topology: tpu7x:2x2x1
jax: 0.10.0
libtpu: 0.0.40
codegen_flags: <defaults>
</compile_context>

<pallas_src>
import jax
import jax.numpy as jnp
from jax.experimental import pallas as pl
from jax.experimental.pallas import tpu as pltpu


HIDDEN = 64        # nn.Linear(input_dim, 64) / nn.Linear(64, 64)
LANE = 128         # vreg lane width
HIDDEN_PAD = 128   # lane-dense hidden width (zero-padded, exact)
_MAX_TILE = 2048   # cap on batch tile rows


def _dqn_kernel(x_ref, w1_ref, b1_ref, w2_ref, b2_ref, w3_ref, b3_ref, out_ref):
    # Invariant: when batch % tb != 0, rows of the edge tile past the logical
    # batch contain unspecified data.  Correct because rows are independent
    # and Pallas masks the out-of-bounds output rows on store.
    x = x_ref[...].astype(jnp.bfloat16)

    # fc1 + relu : bf16 operands on the MXU, f32 accumulate / f32 elementwise.
    h1 = jnp.dot(x, w1_ref[...], preferred_element_type=jnp.float32)
    h1 = jnp.maximum(h1 + b1_ref[...], 0.0)

    # fc2 + relu
    h2 = jnp.dot(h1.astype(jnp.bfloat16), w2_ref[...],
                 preferred_element_type=jnp.float32)
    h2 = jnp.maximum(h2 + b2_ref[...], 0.0)

    # fc3 (no activation) — computed lane-dense (128-wide), then the real
    # out_dim lanes are written compactly.  b3 is unpadded, so out_dim is
    # recovered from the (static) output block shape.
    y = jnp.dot(h2.astype(jnp.bfloat16), w3_ref[...],
                preferred_element_type=jnp.float32)
    out_dim = out_ref.shape[-1]
    out_ref[...] = (y[:, :out_dim] + b3_ref[...]).astype(out_ref.dtype)


def _pad_to(a, shape):
    return jnp.pad(a, [(0, t - s) for s, t in zip(a.shape, shape)])


def _round_up(x, m):
    return ((x + m - 1) // m) * m


def _batch_tile(batch):
    """Batch-tile rows: single 8-aligned tile for small batches, otherwise a
    ~half-batch tile (balances the 2 TensorCores on v7x) capped at _MAX_TILE."""
    if batch <= 128:
        return max(8, _round_up(batch, 8))
    return min(_MAX_TILE, _round_up(-(-batch // 2), 8))


def prepare_dqn_params(w1, b1, w2, b2, w3, b3):
    """One-time weight prep: lane-dense zero padding + bf16 cast of weights.
    Exact: padded biases are 0, ReLU(0)=0, padded rows of W2/W3 are 0, so the
    padded lanes contribute nothing. Call once and cache the result."""
    input_dim = w1.shape[0]
    out_dim = w3.shape[1]
    out_pad = max(LANE, _round_up(out_dim, LANE))

    w1p = _pad_to(w1, (input_dim, HIDDEN_PAD)).astype(jnp.bfloat16)
    b1p = _pad_to(b1, (1, HIDDEN_PAD)).astype(jnp.float32)
    w2p = _pad_to(w2, (HIDDEN_PAD, HIDDEN_PAD)).astype(jnp.bfloat16)
    b2p = _pad_to(b2, (1, HIDDEN_PAD)).astype(jnp.float32)
    w3p = _pad_to(w3, (HIDDEN_PAD, out_pad)).astype(jnp.bfloat16)
    b3p = b3.astype(jnp.float32)                      # stays (1, out_dim), unpadded
    return w1p, b1p, w2p, b2p, w3p, b3p


@jax.jit
def dqn_forward(x, w1p, b1p, w2p, b2p, w3p, b3p):
    """Forward pass. Takes params already processed by prepare_dqn_params."""
    batch, input_dim = x.shape
    out_dim = b3p.shape[-1]

    tb = _batch_tile(batch)
    n_tiles = -(-batch // tb)  # cdiv; last tile may be ragged (masked on store)

    const = lambda i: (0, 0)   # weights/biases stay VMEM-resident across tiles

    flops = 2 * batch * (input_dim * HIDDEN + HIDDEN * HIDDEN + HIDDEN * out_dim)
    bytes_accessed = (
        x.size * x.dtype.itemsize
        + sum(int(a.size) * a.dtype.itemsize for a in (w1p, b1p, w2p, b2p, w3p, b3p))
        + batch * out_dim * 4)

    return pl.pallas_call(
        _dqn_kernel,
        out_shape=jax.ShapeDtypeStruct((batch, out_dim), jnp.float32),
        grid=(n_tiles,),
        in_specs=[
            pl.BlockSpec((tb, input_dim), lambda i: (i, 0)),
            pl.BlockSpec(w1p.shape, const),
            pl.BlockSpec(b1p.shape, const),
            pl.BlockSpec(w2p.shape, const),
            pl.BlockSpec(b2p.shape, const),
            pl.BlockSpec(w3p.shape, const),
            pl.BlockSpec(b3p.shape, const),
        ],
        out_specs=pl.BlockSpec((tb, out_dim), lambda i: (i, 0)),
        compiler_params=pltpu.CompilerParams(
            dimension_semantics=("parallel",)),
        cost_estimate=pl.CostEstimate(
            flops=flops, transcendentals=0, bytes_accessed=bytes_accessed),
    )(x, w1p, b1p, w2p, b2p, w3p, b3p)


def init_dqn_params(key, input_dim, output_dim):
    """PyTorch nn.Linear default init: U(-1/sqrt(fan_in), 1/sqrt(fan_in)).
    Weights are stored transposed as (in_features, out_features)."""
    def linear(k, fan_in, fan_out):
        kw, kb = jax.random.split(k)
        bound = 1.0 / jnp.sqrt(jnp.float32(fan_in))
        w = jax.random.uniform(kw, (fan_in, fan_out), jnp.float32, -bound, bound)
        b = jax.random.uniform(kb, (1, fan_out), jnp.float32, -bound, bound)
        return w, b

    k1, k2, k3 = jax.random.split(key, 3)
    w1, b1 = linear(k1, input_dim, HIDDEN)
    w2, b2 = linear(k2, HIDDEN, HIDDEN)
    w3, b3 = linear(k3, HIDDEN, output_dim)
    return w1, b1, w2, b2, w3, b3


def dqn_reference(x, w1, b1, w2, b2, w3, b3):
    """Pure-JAX reference matching the kernel's numerics
    (bf16 matmul operands, f32 accumulation, f32 bias/ReLU)."""
    bf16, f32 = jnp.bfloat16, jnp.float32
    h1 = jnp.maximum(jnp.dot(x.astype(bf16), w1.astype(bf16),
                             preferred_element_type=f32) + b1, 0.0)
    h2 = jnp.maximum(jnp.dot(h1.astype(bf16), w2.astype(bf16),
                             preferred_element_type=f32) + b2, 0.0)
    return jnp.dot(h2.astype(bf16), w3.astype(bf16),
                   preferred_element_type=f32) + b3


if __name__ == "__main__":
    key = jax.random.PRNGKey(0)
    k_x, k_p = jax.random.split(key)

    batch = 8
    input_dim = 16   # e.g. state-vector size for the pedestrian-flow env
    output_dim = 4   # number of discrete actions

    raw_params = init_dqn_params(k_p, input_dim, output_dim)
    prepared = prepare_dqn_params(*raw_params)   # one-time padding + bf16 cast

    # Small per-step acting batch (single 8-row tile).
    x = jax.random.normal(k_x, (batch, input_dim), dtype=jnp.float32)
    out = jax.block_until_ready(dqn_forward(x, *prepared))
    ref = dqn_reference(x, *raw_params)
    assert out.shape == (batch, output_dim)
    assert jnp.allclose(out, ref, atol=1e-3, rtol=1e-3)

    # Larger training batch: two balanced tiles (504 rows each), with the last
    # tile ragged -> exercises the masked-edge store path and megacore split.
    xb = jax.random.normal(k_x, (1000, input_dim), dtype=jnp.float32)
    outb = jax.block_until_ready(dqn_forward(xb, *prepared))
    refb = dqn_reference(xb, *raw_params)
    assert outb.shape == (1000, output_dim)
    assert jnp.allclose(outb, refb, atol=1e-3, rtol=1e-3)

    print("KERNEL_OK")
</pallas_src>

<mosaic_0001>
module attributes {stable_mosaic.version = 11 : i64} {
  func.func @_dqn_kernel(%arg0: i32, %arg1: memref<8x16xf32, #tpu.memory_space<vmem>>, %arg2: memref<16x128xbf16, #tpu.memory_space<vmem>>, %arg3: memref<1x128xf32, #tpu.memory_space<vmem>>, %arg4: memref<128x128xbf16, #tpu.memory_space<vmem>>, %arg5: memref<1x128xf32, #tpu.memory_space<vmem>>, %arg6: memref<128x128xbf16, #tpu.memory_space<vmem>>, %arg7: memref<1x4xf32, #tpu.memory_space<vmem>>, %arg8: memref<8x4xf32, #tpu.memory_space<vmem>>) attributes {dimension_semantics = [#tpu.dimension_semantics<parallel>], iteration_bounds = array<i64: 1>, scalar_prefetch = 0 : i64, scratch_operands = 0 : i64, tpu.core_type = #tpu.core_type<tc>, window_params = [{transform_indices = @transform_0, window_bounds = array<i64: 8, 16>}, {pipeline_mode = #tpu.pipeline_mode<synchronous>, transform_indices = @transform_1, window_bounds = array<i64: 16, 128>}, {pipeline_mode = #tpu.pipeline_mode<synchronous>, transform_indices = @transform_2, window_bounds = array<i64: 1, 128>}, {pipeline_mode = #tpu.pipeline_mode<synchronous>, transform_indices = @transform_3, window_bounds = array<i64: 128, 128>}, {pipeline_mode = #tpu.pipeline_mode<synchronous>, transform_indices = @transform_4, window_bounds = array<i64: 1, 128>}, {pipeline_mode = #tpu.pipeline_mode<synchronous>, transform_indices = @transform_5, window_bounds = array<i64: 128, 128>}, {pipeline_mode = #tpu.pipeline_mode<synchronous>, transform_indices = @transform_6, window_bounds = array<i64: 1, 4>}, {transform_indices = @transform_7, window_bounds = array<i64: 8, 4>}]} {
    %c0 = arith.constant 0 : index
    %c0_0 = arith.constant 0 : index
    %0 = vector.load %arg1[%c0, %c0_0] : memref<8x16xf32, #tpu.memory_space<vmem>>, vector<8x16xf32>
    %1 = arith.truncf %0 : vector<8x16xf32> to vector<8x16xbf16>
    %c0_1 = arith.constant 0 : index
    %c0_2 = arith.constant 0 : index
    %2 = vector.load %arg2[%c0_1, %c0_2] : memref<16x128xbf16, #tpu.memory_space<vmem>>, vector<16x128xbf16>
    %cst = arith.constant dense<0.000000e+00> : vector<8x128xf32>
    %3 = tpu.matmul %1, %2, %cst {dimension_numbers = #tpu.dot_dimension_numbers<[1], [0], [0], [1], [0, 0, 1, 1], [], []>} : vector<8x16xbf16>, vector<16x128xbf16>, vector<8x128xf32> -> vector<8x128xf32>
    %c0_3 = arith.constant 0 : index
    %c0_4 = arith.constant 0 : index
    %4 = vector.load %arg3[%c0_3, %c0_4] : memref<1x128xf32, #tpu.memory_space<vmem>>, vector<1x128xf32>
    %5 = vector.broadcast %4 : vector<1x128xf32> to vector<8x128xf32>
    %6 = arith.addf %3, %5 : vector<8x128xf32>
    %cst_5 = arith.constant 0.000000e+00 : f32
    %7 = vector.broadcast %cst_5 : f32 to vector<8x128xf32>
    %8 = arith.maximumf %6, %7 : vector<8x128xf32>
    %9 = arith.truncf %8 : vector<8x128xf32> to vector<8x128xbf16>
    %c0_6 = arith.constant 0 : index
    %c0_7 = arith.constant 0 : index
    %10 = vector.load %arg4[%c0_6, %c0_7] : memref<128x128xbf16, #tpu.memory_space<vmem>>, vector<128x128xbf16>
    %cst_8 = arith.constant dense<0.000000e+00> : vector<8x128xf32>
    %11 = tpu.matmul %9, %10, %cst_8 {dimension_numbers = #tpu.dot_dimension_numbers<[1], [0], [0], [1], [0, 0, 1, 1], [], []>} : vector<8x128xbf16>, vector<128x128xbf16>, vector<8x128xf32> -> vector<8x128xf32>
    %c0_9 = arith.constant 0 : index
    %c0_10 = arith.constant 0 : index
    %12 = vector.load %arg5[%c0_9, %c0_10] : memref<1x128xf32, #tpu.memory_space<vmem>>, vector<1x128xf32>
    %13 = vector.broadcast %12 : vector<1x128xf32> to vector<8x128xf32>
    %14 = arith.addf %11, %13 : vector<8x128xf32>
    %cst_11 = arith.constant 0.000000e+00 : f32
    %15 = vector.broadcast %cst_11 : f32 to vector<8x128xf32>
    %16 = arith.maximumf %14, %15 : vector<8x128xf32>
    %17 = arith.truncf %16 : vector<8x128xf32> to vector<8x128xbf16>
    %c0_12 = arith.constant 0 : index
    %c0_13 = arith.constant 0 : index
    %18 = vector.load %arg6[%c0_12, %c0_13] : memref<128x128xbf16, #tpu.memory_space<vmem>>, vector<128x128xbf16>
    %cst_14 = arith.constant dense<0.000000e+00> : vector<8x128xf32>
    %19 = tpu.matmul %17, %18, %cst_14 {dimension_numbers = #tpu.dot_dimension_numbers<[1], [0], [0], [1], [0, 0, 1, 1], [], []>} : vector<8x128xbf16>, vector<128x128xbf16>, vector<8x128xf32> -> vector<8x128xf32>
    %20 = vector.extract_strided_slice %19 {offsets = [0, 0], sizes = [8, 4], strides = [1, 1]} : vector<8x128xf32> to vector<8x4xf32>
    %c0_15 = arith.constant 0 : index
    %c0_16 = arith.constant 0 : index
    %21 = vector.load %arg7[%c0_15, %c0_16] : memref<1x4xf32, #tpu.memory_space<vmem>>, vector<1x4xf32>
    %22 = vector.broadcast %21 : vector<1x4xf32> to vector<8x4xf32>
    %23 = arith.addf %20, %22 : vector<8x4xf32>
    %c0_17 = arith.constant 0 : index
    %c0_18 = arith.constant 0 : index
    %24 = vector.load %arg8[%c0_17, %c0_18] : memref<8x4xf32, #tpu.memory_space<vmem>>, vector<8x4xf32>
    tpu.vector_store %arg8[%c0_17, %c0_18], %23 {strides = array<i32>} : memref<8x4xf32, #tpu.memory_space<vmem>>, vector<8x4xf32>,
    return
  }
  func.func @transform_0(%arg0: i32) -> (i32, i32) {
    %c0_i32 = arith.constant 0 : i32
    %c0_i32_0 = arith.constant 0 : i32
    return %arg0, %c0_i32 : i32, i32
  }
  func.func @transform_1(%arg0: i32) -> (i32, i32) {
    %c0_i32 = arith.constant 0 : i32
    %c0_i32_0 = arith.constant 0 : i32
    %c0_i32_1 = arith.constant 0 : i32
    return %c0_i32, %c0_i32_0 : i32, i32
  }
  func.func @transform_2(%arg0: i32) -> (i32, i32) {
    %c0_i32 = arith.constant 0 : i32
    %c0_i32_0 = arith.constant 0 : i32
    %c0_i32_1 = arith.constant 0 : i32
    return %c0_i32, %c0_i32_0 : i32, i32
  }
  func.func @transform_3(%arg0: i32) -> (i32, i32) {
    %c0_i32 = arith.constant 0 : i32
    %c0_i32_0 = arith.constant 0 : i32
    %c0_i32_1 = arith.constant 0 : i32
    return %c0_i32, %c0_i32_0 : i32, i32
  }
  func.func @transform_4(%arg0: i32) -> (i32, i32) {
    %c0_i32 = arith.constant 0 : i32
    %c0_i32_0 = arith.constant 0 : i32
    %c0_i32_1 = arith.constant 0 : i32
    return %c0_i32, %c0_i32_0 : i32, i32
  }
  func.func @transform_5(%arg0: i32) -> (i32, i32) {
    %c0_i32 = arith.constant 0 : i32
    %c0_i32_0 = arith.constant 0 : i32
    %c0_i32_1 = arith.constant 0 : i32
    return %c0_i32, %c0_i32_0 : i32, i32
  }
  func.func @transform_6(%arg0: i32) -> (i32, i32) {
    %c0_i32 = arith.constant 0 : i32
    %c0_i32_0 = arith.constant 0 : i32
    %c0_i32_1 = arith.constant 0 : i32
    return %c0_i32, %c0_i32_0 : i32, i32
  }
  func.func @transform_7(%arg0: i32) -> (i32, i32) {
    %c0_i32 = arith.constant 0 : i32
    %c0_i32_0 = arith.constant 0 : i32
    return %arg0, %c0_i32 : i32, i32
  }
}

</mosaic_0001>

<bundles_post_ra>
// kernel: dqn_forward.1
= control target key start
LH: loop header
LB: loop body
LE: loop exit
PB: predicated region body
PF: predicated region fallthrough
CT: control target
= control target key end

     0   :  { %12 = vsyncpa [#allocation3], 0  ;;  %s720_s0 = inlined_call_operand.hbm [shape: f32[8,16], index: 0, kind: input, shape index: {}]   ;;  %s721_s1 = inlined_call_operand.hbm [shape: bf16[16,128], index: 1, kind: input, shape index: {}]   ;;  %s722_s2 = inlined_call_operand.vmem [shape: f32[1,128], index: 2, kind: input, shape index: {}]   ;;  %s723_s3 = inlined_call_operand.hbm [shape: bf16[128,128], index: 3, kind: input, shape index: {}]   ;;  %s724_s4 = inlined_call_operand.vmem [shape: f32[1,128], index: 4, kind: input, shape index: {}]   ;;  %s725_s5 = inlined_call_operand.hbm [shape: bf16[128,128], index: 5, kind: input, shape index: {}]   ;;  %s726_s6 = inlined_call_operand.vmem [shape: f32[1,4], index: 6, kind: input, shape index: {}]   ;;  %s727_s7 = inlined_call_operand.vmem [shape: f32[8,4], index: 7, kind: output, shape index: {}]  }
   0x1   :  { %13 = vsyncpa [#allocation5], 0 }
   0x2   :  { %14 = vsyncpa [#allocation8], 0  ;;  %s583_s24 = smov [#allocation4]   ;;  %s489_s28 = scalar_lea.hbm %s721_s1, 128 }
   0x3   :  { %s30_s25 = sshll.u32 %s583_s24, 4  ;;  %p490_p0 = scmp.ne.s32.totalorder %s721_s1, %s489_s28  ;;  %s31_s25 = int_to_ptr.vmem [resolvable:$true] %s30_s25 }
   0x4   :  { %p493_p1 = scmp.lt.u32.totalorder %s489_s28, %s721_s1 }
   0x6   :  { %p495_p2 = pnand %p493_p1, %p490_p0 }
   0x8   :  { %498 = shalt.err (!%p495_p2)
}
   0x9   :  { %s499_s10 = scalar_lea.vmem %s31_s25, 128  ;;  %p504_p4 = scmp.lt.s32.totalorder %s31_s25, %s31_s25 }
   0xa   :  { %p500_p3 = scmp.ne.s32.totalorder %s31_s25, %s499_s10  ;;  %p505_p5 = scmp.lt.s32.totalorder %s499_s10, %s499_s10 }
   0xc   :  { %p506_p6 = por %p505_p5, %p504_p4 }
   0xe   :  { %p507_p7 = pnand %p506_p6, %p500_p3 }
  0x10   :  { %510 = shalt.err (!%p507_p7)
}
  0x11   :  { %s584_s11 = smov 64   ;;  %s585_s12 = smov 4  }
  0x12   :  { %36 = dma.hbm_to_vmem [thread:$0]  %s721_s1, 128, %s31_s25, [#allocation5], %s584_s11, %s584_s11, %s585_s12  }
  0x13   :  { %s586_s15 = smov [#allocation2]   ;;  %s587_s17 = smov [#allocation6]  }
  0x14   :  { %s21_s16 = sshll.u32 %s586_s15, 4  ;;  %s44_s18 = sshll.u32 %s587_s17, 4  ;;  %s22_s16 = int_to_ptr.vmem [resolvable:$true] %s21_s16  ;;  %s45_s18 = int_to_ptr.vmem [resolvable:$true] %s44_s18 }
  0x15   :  { %s511_s21 = scalar_lea.hbm %s720_s0, 128 }
  0x16   :  { %p512_p8 = scmp.ne.s32.totalorder %s720_s0, %s511_s21  ;;  %p515_p9 = scmp.lt.u32.totalorder %s511_s21, %s720_s0 }
  0x18   :  { %p517_p10 = pnand %p515_p9, %p512_p8 }
  0x1a   :  { %520 = shalt.err (!%p517_p10)
}
  0x1b   :  { %s521_s1 = scalar_lea.vmem %s22_s16, 128  ;;  %p526_p12 = scmp.lt.s32.totalorder %s22_s16, %s22_s16 }
  0x1c   :  { %p522_p11 = scmp.ne.s32.totalorder %s22_s16, %s521_s1  ;;  %p527_p13 = scmp.lt.s32.totalorder %s521_s1, %s521_s1 }
  0x1e   :  { %p528_p0 = por %p527_p13, %p526_p12 }
  0x20   :  { %p529_p1 = pnand %p528_p0, %p522_p11 }
  0x22   :  { %532 = shalt.err (!%p529_p1)
}
  0x23   :  { %24 = dma.hbm_to_vmem [thread:$0]  %s720_s0, 128, %s22_s16, [#allocation3]  }
  0x24   :  { %s533_s30 = scalar_lea.hbm %s723_s3, 1024 }
  0x25   :  { %p534_p2 = scmp.ne.s32.totalorder %s723_s3, %s533_s30  ;;  %p537_p3 = scmp.lt.u32.totalorder %s533_s30, %s723_s3 }
  0x27   :  { %p539_p4 = pnand %p537_p3, %p534_p2 }
  0x29   :  { %542 = shalt.err (!%p539_p4)
}
  0x2a   :  { %s543_s14 = scalar_lea.vmem %s45_s18, 1024  ;;  %p548_p6 = scmp.lt.s32.totalorder %s45_s18, %s45_s18 }
  0x2b   :  { %p544_p5 = scmp.ne.s32.totalorder %s45_s18, %s543_s14  ;;  %p549_p7 = scmp.lt.s32.totalorder %s543_s14, %s543_s14 }
  0x2d   :  { %p550_p8 = por %p549_p7, %p548_p6 }
  0x2f   :  { %p551_p9 = pnand %p550_p8, %p544_p5 }
  0x31   :  { %554 = shalt.err (!%p551_p9)
}
  0x32   :  { %50 = dma.hbm_to_vmem [thread:$0]  %s723_s3, 1024, %s45_s18, [#allocation5], %s584_s11, %s584_s11, %s585_s12  }
  0x33   :  { %s588_s16 = smov [#allocation7]   ;;  %s555_s21 = scalar_lea.hbm %s725_s5, 1024 }
  0x34   :  { %s58_s17 = sshll.u32 %s588_s16, 4  ;;  %p556_p10 = scmp.ne.s32.totalorder %s725_s5, %s555_s21  ;;  %s59_s17 = int_to_ptr.vmem [resolvable:$true] %s58_s17 }
  0x35   :  { %p559_p11 = scmp.lt.u32.totalorder %s555_s21, %s725_s5 }
  0x37   :  { %p561_p12 = pnand %p559_p11, %p556_p10 }
  0x39   :  { %564 = shalt.err (!%p561_p12)
}
  0x3a   :  { %s565_s1 = scalar_lea.vmem %s59_s17, 1024  ;;  %p570_p0 = scmp.lt.s32.totalorder %s59_s17, %s59_s17 }
  0x3b   :  { %p566_p13 = scmp.ne.s32.totalorder %s59_s17, %s565_s1  ;;  %p571_p1 = scmp.lt.s32.totalorder %s565_s1, %s565_s1 }
  0x3d   :  { %p572_p2 = por %p571_p1, %p570_p0 }
  0x3f   :  { %p573_p3 = pnand %p572_p2, %p566_p13 }
  0x41   :  { %576 = shalt.err (!%p573_p3)
}
  0x42   :  { %64 = dma.hbm_to_vmem [thread:$0]  %s725_s5, 1024, %s59_s17, [#allocation8], %s584_s11, %s584_s11, %s585_s12  }
  0x43   :  { %577 = dma.done.wait [#allocation3], 128  }
  0x44   :  { %578 = vsyncadd [#allocation3], 4294967168 }
  0x45   :  { %579 = dma.done.wait [#allocation5], 1152  }
  0x46   :  { %580 = vsyncadd [#allocation5], 4294966144 }
  0x47   :  { %581 = dma.done.wait [#allocation8], 1024  }
  0x48   :  { %582 = vsyncadd [#allocation8], 4294966272  ;;  %v589_v0 = vmov 0.0   ;;  %vm590_vm0 = vmmov 0   ;;  %v472_v1 = vld [vmem:[#allocation4] sm:$0xff]   ;;  %v80_v2 = vld [vmem:[#allocation2] sm:$0xff] }
  0x49   :  { %418 = vmatprep.subr.bf16.mxu0 %v589_v0  ;;  %420 = vmatprep.mubr.msk.bf16.mxu0 %vm590_vm0, %v589_v0  ;;  %v81_v3 = vpack.c.bf16 %v80_v2, %v80_v2  ;;  %vm97_vm1 = vcmask 130048   ;;  %v473_v4 = vld [vmem:[#allocation6] sm:$0xff]   ;;  %v474_v5 = vld [vmem:[#allocation6 + $0x8] sm:$0xff]   ;;  %v475_v6 = vld [vmem:[#allocation6 + $0x10] sm:$0xff]   ;;  %vm368_vm2 = vcmask 31744  }
  0x4a   :  { %424 = vmatprep.subr.bf16.mxu1 %v589_v0  ;;  %440 = vmatprep.mubr.msk.bf16.mxu1 %vm590_vm0, %v589_v0  ;;  %v476_v7 = vld [vmem:[#allocation6 + $0x18] sm:$0xff]   ;;  %v477_v8 = vld [vmem:[#allocation6 + $0x20] sm:$0xff]   ;;  %v478_v9 = vld [vmem:[#allocation6 + $0x28] sm:$0xff]  }
  0x4b   :  { %419 = vmatpush3.bf16.msra.mxu0 %v472_v1  ;;  %425 = vmatpush3.bf16.msra.mxu1 %v473_v4  ;;  %v479_v10 = vld [vmem:[#allocation6 + $0x30] sm:$0xff]   ;;  %v480_v11 = vld [vmem:[#allocation6 + $0x38] sm:$0xff]   ;;  %v481_v12 = vld [vmem:[#allocation7] sm:$0xff]  }
  0x4c   :  { %444 = vmatprep.subr.bf16.mxu0 %v589_v0  ;;  %426 = vmatprep.subr.bf16.mxu1 %v589_v0  ;;  %v482_v13 = vld [vmem:[#allocation7 + $0x8] sm:$0xff]   ;;  %v483_v14 = vld [vmem:[#allocation7 + $0x10] sm:$0xff]   ;;  %v484_v15 = vld [vmem:[#allocation7 + $0x18] sm:$0xff]  }
  0x4d   :  { %v485_v16 = vld [vmem:[#allocation7 + $0x20] sm:$0xff]   ;;  %v486_v17 = vld [vmem:[#allocation7 + $0x28] sm:$0xff]   ;;  %v377_v18 = vld [vmem:[%s722_s2] ss:$0 sm:$0xff] }
  0x4e   :  { %421 = vmatmul.mubr.msk.bf16.vlgmr.msra.gmra.mrb[0].mxu0 %vm97_vm1, %v81_v3  ;;  %v487_v26 = vld [vmem:[#allocation7 + $0x30] sm:$0xff]   ;;  %v488_v27 = vld [vmem:[#allocation7 + $0x38] sm:$0xff]  }
  0x4f   :  { %460 = vmatprep.mubr.msk.bf16.mxu0 %vm590_vm0, %v589_v0  ;;  %427 = vmatpush3.bf16.msra.mxu1 %v474_v5  ;;  %v380_v28 = vld [vmem:[%s724_s4] ss:$0 sm:$0xff] }
  0x50   :  { %428 = vmatprep.subr.bf16.mxu1 %v589_v0  ;;  %445 = vmatpush3.bf16.msra.mxu0 %v481_v12  ;;  %v397_v36 = vld [vmem:[%s726_s6] ss:$0 sm:$0xff] }
  0x51   :  { %446 = vmatprep.subr.bf16.mxu0 %v589_v0 }
  0x53   :  { %429 = vmatpush3.bf16.msra.mxu1 %v475_v6 }
  0x54   :  { %430 = vmatprep.subr.bf16.mxu1 %v589_v0  ;;  %447 = vmatpush3.bf16.msra.mxu0 %v482_v13 }
  0x55   :  { %448 = vmatprep.subr.bf16.mxu0 %v589_v0 }
  0x57   :  { %431 = vmatpush3.bf16.msra.mxu1 %v476_v7 }
  0x58   :  { %432 = vmatprep.subr.bf16.mxu1 %v589_v0  ;;  %449 = vmatpush3.bf16.msra.mxu0 %v483_v14 }
  0x59   :  { %450 = vmatprep.subr.bf16.mxu0 %v589_v0 }
  0x5b   :  { %433 = vmatpush3.bf16.msra.mxu1 %v477_v8 }
  0x5c   :  { %434 = vmatprep.subr.bf16.mxu1 %v589_v0  ;;  %451 = vmatpush3.bf16.msra.mxu0 %v484_v15 }
  0x5d   :  { %452 = vmatprep.subr.bf16.mxu0 %v589_v0 }
  0x5f   :  { %435 = vmatpush3.bf16.msra.mxu1 %v478_v9 }
  0x60   :  { %436 = vmatprep.subr.bf16.mxu1 %v589_v0  ;;  %453 = vmatpush3.bf16.msra.mxu0 %v485_v16 }
  0x61   :  { %454 = vmatprep.subr.bf16.mxu0 %v589_v0 }
  0x63   :  { %437 = vmatpush3.bf16.msra.mxu1 %v479_v10 }
  0x64   :  { %438 = vmatprep.subr.bf16.mxu1 %v589_v0  ;;  %455 = vmatpush3.bf16.msra.mxu0 %v486_v17 }
  0x65   :  { %456 = vmatprep.subr.bf16.mxu0 %v589_v0 }
  0x67   :  { %439 = vmatpush3.bf16.msra.mxu1 %v480_v11 }
  0x68   :  { %457 = vmatpush3.bf16.msra.mxu0 %v487_v26 }
  0x69   :  { %458 = vmatprep.subr.bf16.mxu0 %v589_v0 }
  0x6c   :  { %459 = vmatpush3.bf16.msra.mxu0 %v488_v27 }
 0x121   :  { %v135_v19 = vpop.f32.mrb[0].mxu0 }
 0x122   :  { %v136_v20 = vadd.f32 %v377_v18, %v135_v19  ;;  %v422_v21 = vpop.f32.mrb[1].mxu0 }
 0x123   :  { %v138_v22 = vpop.f32.mrb[2].mxu0 }
 0x124   :  { %v141_v23 = vmax.f32 %v136_v20, 0.0  ;;  %v423_v24 = vpop.f32.mrb[3].mxu0 }
 0x126   :  { %v142_v25 = vpack.c.bf16 %v141_v23, %v141_v23 }
 0x128   :  { %441 = vmatmul.mubr.bf16.vlgmr.msra.gmra.mrb[0].mxu1 %v142_v25 }
 0x1fb   :  { %v248_v29 = vpop.f32.mrb[0].mxu1 }
 0x1fc   :  { %v249_v30 = vadd.f32 %v380_v28, %v248_v29  ;;  %v442_v31 = vpop.f32.mrb[1].mxu1 }
 0x1fd   :  { %v251_v32 = vpop.f32.mrb[2].mxu1 }
 0x1fe   :  { %v254_v33 = vmax.f32 %v249_v30, 0.0  ;;  %v443_v34 = vpop.f32.mrb[3].mxu1 }
 0x200   :  { %v255_v35 = vpack.c.bf16 %v254_v33, %v254_v33 }
 0x202   :  { %461 = vmatmul.mubr.bf16.vlgmr.msra.gmra.mrb[4].mxu0 %v255_v35 }
 0x2d5   :  { %v354_v37 = vpop.f32.mrb[4].mxu0 }
 0x2d6   :  { %v367_v38 = vadd.f32 %v397_v36, %v354_v37  ;;  %v462_v39 = vpop.f32.mrb[5].mxu0 }
 0x2d7   :  { %v357_v40 = vpop.f32.mrb[6].mxu0 }
 0x2d8   :  { %369 = vst.msk [vmem:[%s727_s7] sm:$0xff] %vm368_vm2, %v367_v38  ;;  %v463_v41 = vpop.f32.mrb[7].mxu0 }
 0x2d9   :  { %374 = vsyncpa [#allocation3], 1 }
 0x2da   :  { %375 = vsyncpa [#allocation5], 1 }
 0x2db   :  { %376 = vsyncpa [#allocation8], 1 }

</bundles_post_ra>
